<compile_context>
chip_gen: v7x
topology: tpu7x:2x2x1
jax: 0.10.0
libtpu: 0.0.40
codegen_flags: <defaults>
</compile_context>

<pallas_src>
import jax
import jax.numpy as jnp
from jax import lax
from jax.experimental import pallas as pl
from jax.experimental.pallas import tpu as pltpu


def _choose_c_tile(C, HW, max_bytes=8 * 1024 * 1024, max_chans=256):
    """Largest channel tile that (a) divides C, (b) keeps one input block small
    enough for comfortable double-buffering on all TPU generations, and
    (c) respects Mosaic's second-minor tiling rule (multiple of 8, or == C)."""
    cap = max(1, min(max_chans, max_bytes // (HW * 4)))
    if C <= cap:
        return C
    for d in range(cap, 0, -1):
        if C % d == 0 and d % 8 == 0:
            return d
    return C  # no clean divisor under the cap: fall back to one block


def spatial_attention(x, weight, bias):
    """x: (N, C, H, W); weight: (1, 2, 3, 3); bias: (1,)  ->  (N, 1, H, W) f32."""
    N, C, H, W = x.shape
    HW = H * W

    # Lane-dense flat view (free reshape in XLA, no copy for contiguous NCHW).
    xf = x.reshape(N, C, HW)
    if xf.dtype != jnp.float32:
        xf = xf.astype(jnp.float32)

    # Flatten conv weights: [in_c, ky*3+kx]; fold the 1/C of the mean map into
    # the in_c=1 weights so the kernel only needs the running channel *sum*.
    w2 = weight.astype(jnp.float32).reshape(2, 9)
    w_flat = jnp.concatenate([w2[0], w2[1] / jnp.float32(C)])          # (18,)
    b_flat = bias.reshape(-1).astype(jnp.float32)                       # (1,)

    # Edge-validity masks over flattened (H*W) output positions, as f32:
    #   row 0: source row h-1 valid (dy=-1)   row 1: h+1 valid (dy=+1)
    #   row 2: source col w-1 valid (dx=-1)   row 3: w+1 valid (dx=+1)
    row = jnp.arange(H, dtype=jnp.int32).reshape(H, 1)
    col = jnp.arange(W, dtype=jnp.int32).reshape(1, W)
    top = jnp.broadcast_to(row >= 1, (H, W))
    bot = jnp.broadcast_to(row <= H - 2, (H, W))
    left = jnp.broadcast_to(col >= 1, (H, W))
    right = jnp.broadcast_to(col <= W - 2, (H, W))
    edge_masks = jnp.stack([top, bot, left, right]).reshape(4, HW).astype(jnp.float32)

    c_tile = _choose_c_tile(C, HW)
    n_ct = C // c_tile if C % c_tile == 0 else 1
    if C % c_tile != 0:
        c_tile = C

    def kernel(x_ref, mask_ref, w_ref, b_ref, o_ref, ms_scr):
        # x_ref   : (1, c_tile, HW) VMEM block of the flattened input
        # mask_ref: (4, HW) VMEM (edge-validity masks, constant across the grid)
        # w_ref   : (18,) SMEM   b_ref: (1,) SMEM
        # o_ref   : (1, 1, HW) VMEM output block (lane-dense)
        # ms_scr  : (2, HW) VMEM scratch: row 0 = running max, row 1 = running sum
        c_idx = pl.program_id(1)

        # ---- fused channel max + sum over this channel tile (single VMEM pass) ----
        m_blk = None
        s_blk = None
        c0 = 0
        while c0 < c_tile:                       # static unroll (c_tile is Python int)
            csz = min(8, c_tile - c0)
            blk = x_ref[0, c0:c0 + csz, :]                       # (csz, HW)
            bm = jnp.max(blk, axis=0, keepdims=True)             # (1, HW)
            bs = jnp.sum(blk, axis=0, keepdims=True)             # (1, HW)
            m_blk = bm if m_blk is None else jnp.maximum(m_blk, bm)
            s_blk = bs if s_blk is None else s_blk + bs
            c0 += csz

        @pl.when(c_idx == 0)
        def _init():
            ms_scr[0:1, :] = m_blk
            ms_scr[1:2, :] = s_blk

        @pl.when(c_idx > 0)
        def _update():
            ms_scr[0:1, :] = jnp.maximum(ms_scr[0:1, :], m_blk)
            ms_scr[1:2, :] = ms_scr[1:2, :] + s_blk

        # ---- finalize: 3x3 "same" conv (+bias) + sigmoid on the reduced maps ----
        @pl.when(c_idx == pl.num_programs(1) - 1)
        def _finalize():
            maps = ms_scr[...]                                   # (2, HW)
            m_top, m_bot = mask_ref[0:1, :], mask_ref[1:2, :]    # hoisted once
            m_left, m_right = mask_ref[2:3, :], mask_ref[3:4, :]

            acc = jnp.full((1, HW), b_ref[0], dtype=jnp.float32)
            for dy in (-1, 0, 1):
                for dx in (-1, 0, 1):
                    tap = (dy + 1) * 3 + (dx + 1)
                    k = dy * W + dx              # flat offset of source pixel
                    if k == 0:
                        r = maps
                    else:
                        # r[p] = maps[(p + k) % HW]; wrapped entries are masked out.
                        r = pltpu.roll(maps, shift=(-k) % HW, axis=1)
                    contrib = (w_ref[tap] * r[0:1, :]            # max map
                               + w_ref[9 + tap] * r[1:2, :])     # sum map (w already /C)
                    if dy == -1:
                        contrib = contrib * m_top
                    if dy == 1:
                        contrib = contrib * m_bot
                    if dx == -1:
                        contrib = contrib * m_left
                    if dx == 1:
                        contrib = contrib * m_right
                    acc = acc + contrib
            o_ref[0] = jax.nn.sigmoid(acc)                       # (1, HW), lane-dense

    out_flat = pl.pallas_call(
        kernel,
        out_shape=jax.ShapeDtypeStruct((N, 1, HW), jnp.float32),
        grid=(N, n_ct),
        in_specs=[
            pl.BlockSpec((1, c_tile, HW), lambda n, c: (n, c, 0)),
            pl.BlockSpec((4, HW), lambda n, c: (0, 0)),
            pl.BlockSpec(memory_space=pltpu.MemorySpace.SMEM),
            pl.BlockSpec(memory_space=pltpu.MemorySpace.SMEM),
        ],
        out_specs=pl.BlockSpec((1, 1, HW), lambda n, c: (n, 0, 0)),
        scratch_shapes=[pltpu.VMEM((2, HW), jnp.float32)],
        compiler_params=pltpu.CompilerParams(
            dimension_semantics=("parallel", "arbitrary"),
            vmem_limit_bytes=48 * 1024 * 1024,   # fits v7x (64 MiB phys), helps v5e/v6e
        ),
    )(xf, edge_masks, w_flat, b_flat)

    return out_flat.reshape(N, 1, H, W)


def _reference(x, weight, bias):
    # Pure-JAX reference of the PyTorch forward (for a correctness check).
    x1 = jnp.max(x, axis=1, keepdims=True)
    x2 = jnp.mean(x, axis=1, keepdims=True)
    xc = jnp.concatenate([x1, x2], axis=1)
    y = lax.conv_general_dilated(
        xc, weight, window_strides=(1, 1), padding="SAME",
        dimension_numbers=("NCHW", "OIHW", "NCHW"))
    y = y + bias.reshape(1, -1, 1, 1)
    return jax.nn.sigmoid(y)


if __name__ == "__main__":
    key = jax.random.PRNGKey(0)
    k_x, k_w, k_b = jax.random.split(key, 3)

    N, C, H, W = 2, 4, 16, 16
    x = jax.random.normal(k_x, (N, C, H, W), dtype=jnp.float32)

    # Deterministic synthetic parameters for conv3x3: Conv2d(2, 1, 3, padding=1, bias=True).
    weight = 0.1 * jax.random.normal(k_w, (1, 2, 3, 3), dtype=jnp.float32)
    bias = 0.01 * jax.random.normal(k_b, (1,), dtype=jnp.float32)

    out = spatial_attention(x, weight, bias)
    out = jax.block_until_ready(out)

    ref = _reference(x, weight, bias)
    assert out.shape == (N, 1, H, W)
    assert jnp.allclose(out, ref, atol=1e-5, rtol=1e-5), "mismatch vs JAX reference"

    print("KERNEL_OK")
</pallas_src>

<mosaic_0001>
module attributes {stable_mosaic.version = 11 : i64} {
  func.func @kernel(%arg0: i32, %arg1: i32, %arg2: memref<1x4x256xf32, #tpu.memory_space<vmem>>, %arg3: memref<4x256xf32, #tpu.memory_space<vmem>>, %arg4: memref<18xf32, #tpu.memory_space<smem>>, %arg5: memref<1xf32, #tpu.memory_space<smem>>, %arg6: memref<1x1x256xf32, #tpu.memory_space<vmem>>, %arg7: memref<2x256xf32, #tpu.memory_space<vmem>>) attributes {dimension_semantics = [#tpu.dimension_semantics<parallel>, #tpu.dimension_semantics<arbitrary>], iteration_bounds = array<i64: 2, 1>, scalar_prefetch = 0 : i64, scratch_operands = 1 : i64, tpu.core_type = #tpu.core_type<tc>, window_params = [{transform_indices = @transform_0, window_bounds = array<i64: 1, 4, 256>}, {pipeline_mode = #tpu.pipeline_mode<synchronous>, transform_indices = @transform_1, window_bounds = array<i64: 4, 256>}, {transform_indices = @transform_2, window_bounds = array<i64: 18>}, {transform_indices = @transform_3, window_bounds = array<i64: 1>}, {transform_indices = @transform_4, window_bounds = array<i64: 1, 1, 256>}]} {
    %c0 = arith.constant 0 : index
    %c0_0 = arith.constant 0 : index
    %c0_1 = arith.constant 0 : index
    %0 = vector.load %arg2[%c0, %c0_0, %c0_1] : memref<1x4x256xf32, #tpu.memory_space<vmem>>, vector<1x4x256xf32>
    %1 = vector.shape_cast %0 : vector<1x4x256xf32> to vector<4x256xf32>
    %cst = arith.constant dense<0xFF800000> : vector<256xf32>
    %2 = vector.multi_reduction <maximumf>, %1, %cst [0] : vector<4x256xf32> to vector<256xf32>
    %3 = vector.shape_cast %2 : vector<256xf32> to vector<1x256xf32>
    %cst_2 = arith.constant dense<0.000000e+00> : vector<256xf32>
    %4 = vector.multi_reduction <add>, %1, %cst_2 [0] : vector<4x256xf32> to vector<256xf32>
    %5 = vector.shape_cast %4 : vector<256xf32> to vector<1x256xf32>
    %c0_i32 = arith.constant 0 : i32
    %6 = arith.cmpi eq, %arg1, %c0_i32 : i32
    %7 = arith.extui %6 : i1 to i32
    %c0_i32_3 = arith.constant 0 : i32
    %8 = arith.cmpi ne, %7, %c0_i32_3 : i32
    scf.if %8 {
      %c0_8 = arith.constant 0 : index
      %c0_9 = arith.constant 0 : index
      %15 = vector.load %arg7[%c0_8, %c0_9] : memref<2x256xf32, #tpu.memory_space<vmem>>, vector<1x256xf32>
      tpu.vector_store %arg7[%c0_8, %c0_9], %3 {strides = array<i32>} : memref<2x256xf32, #tpu.memory_space<vmem>>, vector<1x256xf32>,
      %c1 = arith.constant 1 : index
      %c0_10 = arith.constant 0 : index
      %16 = vector.load %arg7[%c1, %c0_10] : memref<2x256xf32, #tpu.memory_space<vmem>>, vector<1x256xf32>
      tpu.vector_store %arg7[%c1, %c0_10], %5 {strides = array<i32>} : memref<2x256xf32, #tpu.memory_space<vmem>>, vector<1x256xf32>,
    } else {
    }
    %c0_i32_4 = arith.constant 0 : i32
    %9 = arith.cmpi sgt, %arg1, %c0_i32_4 : i32
    %10 = arith.extui %9 : i1 to i32
    %c0_i32_5 = arith.constant 0 : i32
    %11 = arith.cmpi ne, %10, %c0_i32_5 : i32
    scf.if %11 {
      %c0_8 = arith.constant 0 : index
      %c0_9 = arith.constant 0 : index
      %15 = vector.load %arg7[%c0_8, %c0_9] : memref<2x256xf32, #tpu.memory_space<vmem>>, vector<1x256xf32>
      %16 = arith.maximumf %15, %3 : vector<1x256xf32>
      %c0_10 = arith.constant 0 : index
      %c0_11 = arith.constant 0 : index
      %17 = vector.load %arg7[%c0_10, %c0_11] : memref<2x256xf32, #tpu.memory_space<vmem>>, vector<1x256xf32>
      tpu.vector_store %arg7[%c0_10, %c0_11], %16 {strides = array<i32>} : memref<2x256xf32, #tpu.memory_space<vmem>>, vector<1x256xf32>,
      %c1 = arith.constant 1 : index
      %c0_12 = arith.constant 0 : index
      %18 = vector.load %arg7[%c1, %c0_12] : memref<2x256xf32, #tpu.memory_space<vmem>>, vector<1x256xf32>
      %19 = arith.addf %18, %5 : vector<1x256xf32>
      %c1_13 = arith.constant 1 : index
      %c0_14 = arith.constant 0 : index
      %20 = vector.load %arg7[%c1_13, %c0_14] : memref<2x256xf32, #tpu.memory_space<vmem>>, vector<1x256xf32>
      tpu.vector_store %arg7[%c1_13, %c0_14], %19 {strides = array<i32>} : memref<2x256xf32, #tpu.memory_space<vmem>>, vector<1x256xf32>,
    } else {
    }
    %c0_i32_6 = arith.constant 0 : i32
    %12 = arith.cmpi eq, %arg1, %c0_i32_6 : i32
    %13 = arith.extui %12 : i1 to i32
    %c0_i32_7 = arith.constant 0 : i32
    %14 = arith.cmpi ne, %13, %c0_i32_7 : i32
    scf.if %14 {
      %c0_8 = arith.constant 0 : index
      %c0_9 = arith.constant 0 : index
      %15 = vector.load %arg7[%c0_8, %c0_9] : memref<2x256xf32, #tpu.memory_space<vmem>>, vector<2x256xf32>
      %c0_10 = arith.constant 0 : index
      %c0_11 = arith.constant 0 : index
      %16 = vector.load %arg3[%c0_10, %c0_11] : memref<4x256xf32, #tpu.memory_space<vmem>>, vector<1x256xf32>
      %c1 = arith.constant 1 : index
      %c0_12 = arith.constant 0 : index
      %17 = vector.load %arg3[%c1, %c0_12] : memref<4x256xf32, #tpu.memory_space<vmem>>, vector<1x256xf32>
      %c2 = arith.constant 2 : index
      %c0_13 = arith.constant 0 : index
      %18 = vector.load %arg3[%c2, %c0_13] : memref<4x256xf32, #tpu.memory_space<vmem>>, vector<1x256xf32>
      %c3 = arith.constant 3 : index
      %c0_14 = arith.constant 0 : index
      %19 = vector.load %arg3[%c3, %c0_14] : memref<4x256xf32, #tpu.memory_space<vmem>>, vector<1x256xf32>
      %c0_15 = arith.constant 0 : index
      %20 = memref.load %arg5[%c0_15] : memref<1xf32, #tpu.memory_space<smem>>
      %21 = vector.broadcast %20 : f32 to vector<1x256xf32>
      %c17_i32 = arith.constant 17 : i32
      %22 = tpu.dynamic_rotate %15 by %c17_i32 dim 1 : vector<2x256xf32>, i32 -> vector<2x256xf32>
      %c0_16 = arith.constant 0 : index
      %23 = memref.load %arg4[%c0_16] : memref<18xf32, #tpu.memory_space<smem>>
      %24 = vector.extract_strided_slice %22 {offsets = [0, 0], sizes = [1, 256], strides = [1, 1]} : vector<2x256xf32> to vector<1x256xf32>
      %25 = vector.broadcast %23 : f32 to vector<1x256xf32>
      %26 = arith.mulf %25, %24 : vector<1x256xf32>
      %c9 = arith.constant 9 : index
      %27 = memref.load %arg4[%c9] : memref<18xf32, #tpu.memory_space<smem>>
      %28 = vector.extract_strided_slice %22 {offsets = [1, 0], sizes = [1, 256], strides = [1, 1]} : vector<2x256xf32> to vector<1x256xf32>
      %29 = vector.broadcast %27 : f32 to vector<1x256xf32>
      %30 = arith.mulf %29, %28 : vector<1x256xf32>
      %31 = arith.addf %26, %30 : vector<1x256xf32>
      %32 = arith.mulf %31, %16 : vector<1x256xf32>
      %33 = arith.mulf %32, %18 : vector<1x256xf32>
      %34 = arith.addf %21, %33 : vector<1x256xf32>
      %c16_i32 = arith.constant 16 : i32
      %35 = tpu.dynamic_rotate %15 by %c16_i32 dim 1 : vector<2x256xf32>, i32 -> vector<2x256xf32>
      %c1_17 = arith.constant 1 : index
      %36 = memref.load %arg4[%c1_17] : memref<18xf32, #tpu.memory_space<smem>>
      %37 = vector.extract_strided_slice %35 {offsets = [0, 0], sizes = [1, 256], strides = [1, 1]} : vector<2x256xf32> to vector<1x256xf32>
      %38 = vector.broadcast %36 : f32 to vector<1x256xf32>
      %39 = arith.mulf %38, %37 : vector<1x256xf32>
      %c10 = arith.constant 10 : index
      %40 = memref.load %arg4[%c10] : memref<18xf32, #tpu.memory_space<smem>>
      %41 = vector.extract_strided_slice %35 {offsets = [1, 0], sizes = [1, 256], strides = [1, 1]} : vector<2x256xf32> to vector<1x256xf32>
      %42 = vector.broadcast %40 : f32 to vector<1x256xf32>
      %43 = arith.mulf %42, %41 : vector<1x256xf32>
      %44 = arith.addf %39, %43 : vector<1x256xf32>
      %45 = arith.mulf %44, %16 : vector<1x256xf32>
      %46 = arith.addf %34, %45 : vector<1x256xf32>
      %c15_i32 = arith.constant 15 : i32
      %47 = tpu.dynamic_rotate %15 by %c15_i32 dim 1 : vector<2x256xf32>, i32 -> vector<2x256xf32>
      %c2_18 = arith.constant 2 : index
      %48 = memref.load %arg4[%c2_18] : memref<18xf32, #tpu.memory_space<smem>>
      %49 = vector.extract_strided_slice %47 {offsets = [0, 0], sizes = [1, 256], strides = [1, 1]} : vector<2x256xf32> to vector<1x256xf32>
      %50 = vector.broadcast %48 : f32 to vector<1x256xf32>
      %51 = arith.mulf %50, %49 : vector<1x256xf32>
      %c11 = arith.constant 11 : index
      %52 = memref.load %arg4[%c11] : memref<18xf32, #tpu.memory_space<smem>>
      %53 = vector.extract_strided_slice %47 {offsets = [1, 0], sizes = [1, 256], strides = [1, 1]} : vector<2x256xf32> to vector<1x256xf32>
      %54 = vector.broadcast %52 : f32 to vector<1x256xf32>
      %55 = arith.mulf %54, %53 : vector<1x256xf32>
      %56 = arith.addf %51, %55 : vector<1x256xf32>
      %57 = arith.mulf %56, %16 : vector<1x256xf32>
      %58 = arith.mulf %57, %19 : vector<1x256xf32>
      %59 = arith.addf %46, %58 : vector<1x256xf32>
      %c1_i32 = arith.constant 1 : i32
      %60 = tpu.dynamic_rotate %15 by %c1_i32 dim 1 : vector<2x256xf32>, i32 -> vector<2x256xf32>
      %c3_19 = arith.constant 3 : index
      %61 = memref.load %arg4[%c3_19] : memref<18xf32, #tpu.memory_space<smem>>
      %62 = vector.extract_strided_slice %60 {offsets = [0, 0], sizes = [1, 256], strides = [1, 1]} : vector<2x256xf32> to vector<1x256xf32>
      %63 = vector.broadcast %61 : f32 to vector<1x256xf32>
      %64 = arith.mulf %63, %62 : vector<1x256xf32>
      %c12 = arith.constant 12 : index
      %65 = memref.load %arg4[%c12] : memref<18xf32, #tpu.memory_space<smem>>
      %66 = vector.extract_strided_slice %60 {offsets = [1, 0], sizes = [1, 256], strides = [1, 1]} : vector<2x256xf32> to vector<1x256xf32>
      %67 = vector.broadcast %65 : f32 to vector<1x256xf32>
      %68 = arith.mulf %67, %66 : vector<1x256xf32>
      %69 = arith.addf %64, %68 : vector<1x256xf32>
      %70 = arith.mulf %69, %18 : vector<1x256xf32>
      %71 = arith.addf %59, %70 : vector<1x256xf32>
      %c4 = arith.constant 4 : index
      %72 = memref.load %arg4[%c4] : memref<18xf32, #tpu.memory_space<smem>>
      %73 = vector.extract_strided_slice %15 {offsets = [0, 0], sizes = [1, 256], strides = [1, 1]} : vector<2x256xf32> to vector<1x256xf32>
      %74 = vector.broadcast %72 : f32 to vector<1x256xf32>
      %75 = arith.mulf %74, %73 : vector<1x256xf32>
      %c13 = arith.constant 13 : index
      %76 = memref.load %arg4[%c13] : memref<18xf32, #tpu.memory_space<smem>>
      %77 = vector.extract_strided_slice %15 {offsets = [1, 0], sizes = [1, 256], strides = [1, 1]} : vector<2x256xf32> to vector<1x256xf32>
      %78 = vector.broadcast %76 : f32 to vector<1x256xf32>
      %79 = arith.mulf %78, %77 : vector<1x256xf32>
      %80 = arith.addf %75, %79 : vector<1x256xf32>
      %81 = arith.addf %71, %80 : vector<1x256xf32>
      %c255_i32 = arith.constant 255 : i32
      %82 = tpu.dynamic_rotate %15 by %c255_i32 dim 1 : vector<2x256xf32>, i32 -> vector<2x256xf32>
      %c5 = arith.constant 5 : index
      %83 = memref.load %arg4[%c5] : memref<18xf32, #tpu.memory_space<smem>>
      %84 = vector.extract_strided_slice %82 {offsets = [0, 0], sizes = [1, 256], strides = [1, 1]} : vector<2x256xf32> to vector<1x256xf32>
      %85 = vector.broadcast %83 : f32 to vector<1x256xf32>
      %86 = arith.mulf %85, %84 : vector<1x256xf32>
      %c14 = arith.constant 14 : index
      %87 = memref.load %arg4[%c14] : memref<18xf32, #tpu.memory_space<smem>>
      %88 = vector.extract_strided_slice %82 {offsets = [1, 0], sizes = [1, 256], strides = [1, 1]} : vector<2x256xf32> to vector<1x256xf32>
      %89 = vector.broadcast %87 : f32 to vector<1x256xf32>
      %90 = arith.mulf %89, %88 : vector<1x256xf32>
      %91 = arith.addf %86, %90 : vector<1x256xf32>
      %92 = arith.mulf %91, %19 : vector<1x256xf32>
      %93 = arith.addf %81, %92 : vector<1x256xf32>
      %c241_i32 = arith.constant 241 : i32
      %94 = tpu.dynamic_rotate %15 by %c241_i32 dim 1 : vector<2x256xf32>, i32 -> vector<2x256xf32>
      %c6 = arith.constant 6 : index
      %95 = memref.load %arg4[%c6] : memref<18xf32, #tpu.memory_space<smem>>
      %96 = vector.extract_strided_slice %94 {offsets = [0, 0], sizes = [1, 256], strides = [1, 1]} : vector<2x256xf32> to vector<1x256xf32>
      %97 = vector.broadcast %95 : f32 to vector<1x256xf32>
      %98 = arith.mulf %97, %96 : vector<1x256xf32>
      %c15 = arith.constant 15 : index
      %99 = memref.load %arg4[%c15] : memref<18xf32, #tpu.memory_space<smem>>
      %100 = vector.extract_strided_slice %94 {offsets = [1, 0], sizes = [1, 256], strides = [1, 1]} : vector<2x256xf32> to vector<1x256xf32>
      %101 = vector.broadcast %99 : f32 to vector<1x256xf32>
      %102 = arith.mulf %101, %100 : vector<1x256xf32>
      %103 = arith.addf %98, %102 : vector<1x256xf32>
      %104 = arith.mulf %103, %17 : vector<1x256xf32>
      %105 = arith.mulf %104, %18 : vector<1x256xf32>
      %106 = arith.addf %93, %105 : vector<1x256xf32>
      %c240_i32 = arith.constant 240 : i32
      %107 = tpu.dynamic_rotate %15 by %c240_i32 dim 1 : vector<2x256xf32>, i32 -> vector<2x256xf32>
      %c7 = arith.constant 7 : index
      %108 = memref.load %arg4[%c7] : memref<18xf32, #tpu.memory_space<smem>>
      %109 = vector.extract_strided_slice %107 {offsets = [0, 0], sizes = [1, 256], strides = [1, 1]} : vector<2x256xf32> to vector<1x256xf32>
      %110 = vector.broadcast %108 : f32 to vector<1x256xf32>
      %111 = arith.mulf %110, %109 : vector<1x256xf32>
      %c16 = arith.constant 16 : index
      %112 = memref.load %arg4[%c16] : memref<18xf32, #tpu.memory_space<smem>>
      %113 = vector.extract_strided_slice %107 {offsets = [1, 0], sizes = [1, 256], strides = [1, 1]} : vector<2x256xf32> to vector<1x256xf32>
      %114 = vector.broadcast %112 : f32 to vector<1x256xf32>
      %115 = arith.mulf %114, %113 : vector<1x256xf32>
      %116 = arith.addf %111, %115 : vector<1x256xf32>
      %117 = arith.mulf %116, %17 : vector<1x256xf32>
      %118 = arith.addf %106, %117 : vector<1x256xf32>
      %c239_i32 = arith.constant 239 : i32
      %119 = tpu.dynamic_rotate %15 by %c239_i32 dim 1 : vector<2x256xf32>, i32 -> vector<2x256xf32>
      %c8 = arith.constant 8 : index
      %120 = memref.load %arg4[%c8] : memref<18xf32, #tpu.memory_space<smem>>
      %121 = vector.extract_strided_slice %119 {offsets = [0, 0], sizes = [1, 256], strides = [1, 1]} : vector<2x256xf32> to vector<1x256xf32>
      %122 = vector.broadcast %120 : f32 to vector<1x256xf32>
      %123 = arith.mulf %122, %121 : vector<1x256xf32>
      %c17 = arith.constant 17 : index
      %124 = memref.load %arg4[%c17] : memref<18xf32, #tpu.memory_space<smem>>
      %125 = vector.extract_strided_slice %119 {offsets = [1, 0], sizes = [1, 256], strides = [1, 1]} : vector<2x256xf32> to vector<1x256xf32>
      %126 = vector.broadcast %124 : f32 to vector<1x256xf32>
      %127 = arith.mulf %126, %125 : vector<1x256xf32>
      %128 = arith.addf %123, %127 : vector<1x256xf32>
      %129 = arith.mulf %128, %17 : vector<1x256xf32>
      %130 = arith.mulf %129, %19 : vector<1x256xf32>
      %131 = arith.addf %118, %130 : vector<1x256xf32>
      %132 = arith.negf %131 : vector<1x256xf32>
      %133 = math.exp %132 : vector<1x256xf32>
      %cst_20 = arith.constant 1.000000e+00 : f32
      %134 = vector.broadcast %cst_20 : f32 to vector<1x256xf32>
      %135 = arith.addf %134, %133 : vector<1x256xf32>
      %136 = arith.divf %134, %135 : vector<1x256xf32>
      %c0_21 = arith.constant 0 : index
      %c0_22 = arith.constant 0 : index
      %c0_23 = arith.constant 0 : index
      %137 = vector.load %arg6[%c0_21, %c0_22, %c0_23] : memref<1x1x256xf32, #tpu.memory_space<vmem>>, vector<1x1x256xf32>
      %138 = vector.shape_cast %137 : vector<1x1x256xf32> to vector<1x256xf32>
      %139 = vector.shape_cast %136 : vector<1x256xf32> to vector<1x1x256xf32>
      tpu.vector_store %arg6[%c0_21, %c0_22, %c0_23], %139 {strides = array<i32>} : memref<1x1x256xf32, #tpu.memory_space<vmem>>, vector<1x1x256xf32>,
    } else {
    }
    return
  }
  func.func @transform_0(%arg0: i32, %arg1: i32) -> (i32, i32, i32) {
    %c0_i32 = arith.constant 0 : i32
    %c0_i32_0 = arith.constant 0 : i32
    return %arg0, %arg1, %c0_i32 : i32, i32, i32
  }
  func.func @transform_1(%arg0: i32, %arg1: i32) -> (i32, i32) {
    %c0_i32 = arith.constant 0 : i32
    %c0_i32_0 = arith.constant 0 : i32
    %c0_i32_1 = arith.constant 0 : i32
    return %c0_i32, %c0_i32_0 : i32, i32
  }
  func.func @transform_2(%arg0: i32, %arg1: i32) -> i32 {
    %c0_i32 = arith.constant 0 : i32
    %c0_i32_0 = arith.constant 0 : i32
    return %c0_i32 : i32
  }
  func.func @transform_3(%arg0: i32, %arg1: i32) -> i32 {
    %c0_i32 = arith.constant 0 : i32
    %c0_i32_0 = arith.constant 0 : i32
    return %c0_i32 : i32
  }
  func.func @transform_4(%arg0: i32, %arg1: i32) -> (i32, i32, i32) {
    %c0_i32 = arith.constant 0 : i32
    %c0_i32_0 = arith.constant 0 : i32
    %c0_i32_1 = arith.constant 0 : i32
    return %arg0, %c0_i32, %c0_i32_0 : i32, i32, i32
  }
}

</mosaic_0001>

<bundles_post_ra>
// kernel: tpu_custom_call.1
= control target key start
LH: loop header
LB: loop body
LE: loop exit
PB: predicated region body
PF: predicated region fallthrough
CT: control target
= control target key end

     0   :  { %s1662_s0 = inlined_call_operand.hbm [shape: f32[2,4,256], index: 0, kind: input, shape index: {}]   ;;  %s1663_s1 = inlined_call_operand.hbm [shape: f32[4,256], index: 1, kind: input, shape index: {}]   ;;  %s1664_s2 = inlined_call_operand.vmem [shape: f32[18], index: 2, kind: input, shape index: {}]   ;;  %s1665_s3 = inlined_call_operand.<no memory space> [shape: f32[1], index: 3, kind: input, shape index: {}]   ;;  %s1666_s4 = inlined_call_operand.hbm [shape: f32[2,1,256], index: 4, kind: output, shape index: {}]  }
   0x1   :  { %9 = sst [smem:[#allocation3]] %s1665_s3 }
   0x2   :  { %10 = vsyncpa [#allocation5], 0 }
   0x3   :  { %12 = vsyncpa [#allocation5 + $0x1], 0 }
   0x4   :  { %13 = vsyncpa [#allocation9], 0 }
   0x5   :  { %14 = vsyncpa [#allocation7], 0 }
   0x6   :  { %15 = vsyncpa [#allocation6], 0 }
   0x7   :  { %17 = vsyncpa [#allocation6 + $0x1], 0  ;;  %s1210_s17 = smov 0   ;;  %s1212_s18 = smov 0  }
   0x8   :  { %s1214_s19 = smov 0   ;;  %s1216_s20 = smov 0  }
   0x9   :  { %s1218_s21 = smov 0   ;;  %s1220_s22 = smov 0  }
   0xa LB: > { %s860_s3 = sadd.s32 4294967295, %s1166_s22   ;;  %s861_s23 = sadd.s32 4294967294, %s1166_s22   ;;  %s1166_s22 = sphi %s1220_s22, %s23_s22   ;;  %s1162_s21 = sphi %s1218_s21, %s1691_s21   ;;  %s1158_s20 = sphi %s1216_s20, %s1690_s20   ;;  %s1154_s19 = sphi %s1214_s19, %s1689_s19   ;;  %s1150_s18 = sphi %s1212_s18, %s1688_s18   ;;  %s1146_s17 = sphi %s1210_s17, %s1687_s17  }
   0xb   : > { %p57_p0 = scmp.ne.s32.totalorder %s1150_s18, %s1146_s17  ;;  %p1244_p1 = scmp.eq.s32.totalorder %s860_s3, 0 }
   0xc   : > { %p1248_p2 = scmp.eq.s32.totalorder %s860_s3, 1  ;;  %p150_p3 = scmp.eq.s32.totalorder %s861_s23, 1 }
   0xd   : > { %s1671_s24 = scalar_select %p1244_p1, 1, 0 }
   0xe   : > { %s1672_s25 = scalar_select %p1248_p2, 1, 0 }
   0xf   : > { %p1254_p4 = por %p1244_p1, %p57_p0  ;;  %p862_p5 = scmp.ge.s32.totalorder %s1166_s22, 1 }
  0x10   : > { %p1259_p6 = por %p150_p3, %p57_p0  ;;  %p157_p7 = scmp.lt.s32.totalorder %s1166_s22, 3 }
  0x11   : > { %s1673_s26 = scalar_select %p1254_p4, 1, 0 }
  0x12   : > { %s1674_s27 = scalar_select %p1259_p6, 1, 0 }
  0x13   : > { %p1264_p8 = pnand %p862_p5, %p157_p7  ;;  %s1168_s29 = smov [#allocation8]  }
  0x14   : > { %s170_s30 = sshll.u32 %s1168_s29, 4  ;;  %s181_s7 = sshll.u32 %s1664_s2, 4  ;;  %s171_s30 = int_to_ptr.vmem [resolvable:$true] %s170_s30  ;;  %s1274_s7 = int_to_ptr.vmem [resolvable:$true] %s181_s7 }
  0x15   : > { %s1675_s28 = scalar_select %p1264_p8, 1, 0 }
  0x16   : > { %p913_p10 = pneg %p1264_p8  ;;  %s1003_s11 = scalar_lea.hbm %s1663_s1, 128 }
  0x17   : > { %p1004_p12 = scmp.ne.s32.totalorder %s1663_s1, %s1003_s11  ;;  %p1010_p5 = scmp.lt.u32.totalorder %s1003_s11, %s1663_s1 }
  0x18   : > { %p1278_p11 = pnand %p913_p10, %p1244_p1 }
  0x1a   : > { %p1005_p13 = pneg %p1278_p11 }
  0x1c   : > { %p1006_p0 = pnand %p1005_p13, %p1004_p12 }
  0x1e   : > { %p1007_p3 = pneg %p1006_p0 }
  0x20   : > { %p1012_p7 = pnand %p1010_p5, %p1007_p3 }
  0x22   : > { %1015 = shalt.err (!%p1012_p7)
}
  0x23   : > { %s1016_s16 = scalar_lea.vmem %s171_s30, 128  ;;  %p1024_p1 = scmp.lt.s32.totalorder %s171_s30, %s171_s30 }
  0x24   : > { %p1017_p10 = scmp.ne.s32.totalorder %s171_s30, %s1016_s16  ;;  %p1025_p4 = scmp.lt.s32.totalorder %s1016_s16, %s1016_s16 }
  0x26   : > { %p1019_p9 = pnand %p1017_p10, %p1005_p13  ;;  %p1026_p8 = por %p1025_p4, %p1024_p1 }
  0x28   : > { %p1020_p6 = pneg %p1019_p9 }
  0x2a   : > { %p1027_p2 = pnand %p1026_p8, %p1020_p6 }
  0x2c   : > { %1030 = shalt.err (!%p1027_p2)
}
  0x2d   : > { %916 = dma.hbm_to_vmem [thread:$0]  (!%p1278_p11), %s1663_s1, 128, %s171_s30, [#allocation9]  }
  0x2e   : > { %s1031_s29 = scalar_lea.vmem %s1274_s7, 16  ;;  %p1039_p1 = scmp.lt.s32.totalorder %s1274_s7, %s1274_s7 }
  0x2f   : > { %p1032_p12 = scmp.ne.s32.totalorder %s1274_s7, %s1031_s29  ;;  %p1040_p4 = scmp.lt.s32.totalorder %s1031_s29, %s1031_s29 }
  0x31   : > { %p1034_p9 = pnand %p1032_p12, %p1005_p13  ;;  %p1041_p2 = por %p1040_p4, %p1039_p1 }
  0x33   : > { %p1035_p0 = pneg %p1034_p9 }
  0x35   : > { %p1042_p6 = pnand %p1041_p2, %p1035_p0 }
  0x37   : > { %1045 = shalt.err (!%p1042_p6)
}
  0x38   : > { %s1169_s5 = smov [#allocation10]   ;;  %s35_s30 = sadd.s32 1, %s1162_s21 }
  0x39   : > { %919 = dma.vmem_to_smem (!%p1278_p11), %s1274_s7, 16, %s1169_s5, [#allocation7]  }
  0x3a   : > { %s44_s6 = sadd.s32 1, %s1154_s19  ;;  %p37_p8 = scmp.ge.s32.totalorder %s35_s30, 2 }
  0x3b   : > { %p51_p13 = scmp.ne.s32.totalorder %s1154_s19, %s1150_s18  ;;  %p52_p3 = scmp.eq.s32.totalorder %s1166_s22, 0 }
  0x3c   : > { %p930_p5 = scmp.lt.s32.totalorder %s1166_s22, 2  ;;  %s1693_s30 = smov (%p37_p8, %s35_s30), 0 }
  0x3d   : > { %p53_p7 = por %p52_p3, %p51_p13  ;;  %p1677_p10 = scmp.ne.s32.totalorder %s1672_s25, 0 }
  0x3e   : > { %s39_s9 = ssub.s32 %s1162_s21, %s1693_s30  ;;  %s195_s10 = sand.u32 1, %s1154_s19  }
  0x3f   : > { %p1324_p12 = por %p1677_p10, %p51_p13  ;;  %p42_p9 = scmp.eq.s32.totalorder %s39_s9, 0 }
  0x40   : > { %s866_s7 = sshll.u32 %s195_s10, 3  ;;  %s899_s11 = sshll.u32 %s1162_s21, 7 }
  0x41   : > { %s1333_s12 = scalar_select %p42_p9, %s1154_s19, %s44_s6  }
  0x42   : > { %s1338_s15 = scalar_lea.hbm %s1662_s0, %s899_s11  ;;  %s199_s25 = scalar_lea.vmem [#allocation4], %s866_s7 }
  0x43   : > { %s209_s16 = sshll.u32 %s199_s25, 4  ;;  %p1342_p11 = pnand %p930_p5, %p53_p7  ;;  %s1346_s16 = int_to_ptr.vmem [resolvable:$true] %s209_s16 }
  0x44   : > { %s196_s23 = scalar_lea.sflag [#allocation5], %s195_s10  ;;  %s1046_s29 = scalar_lea.hbm %s1338_s15, 128 }
  0x45   : > { %p1047_p0 = scmp.ne.s32.totalorder %s1338_s15, %s1046_s29  ;;  %p1048_p1 = pneg %p1342_p11 }
  0x46   : > { %s1051_s9 = scalar_lea.hbm %s1662_s0, 256  ;;  %p1052_p6 = scmp.lt.u32.totalorder %s1338_s15, %s1662_s0 }
  0x47   : > { %p1049_p4 = pnand %p1048_p1, %p1047_p0  ;;  %p1053_p8 = scmp.lt.u32.totalorder %s1051_s9, %s1046_s29 }
  0x48   : > { %p1055_p3 = scmp.lt.u32.totalorder %s1046_s29, %s1338_s15 }
  0x49   : > { %p1050_p2 = pneg %p1049_p4  ;;  %p1054_p13 = por %p1053_p8, %p1052_p6 }
  0x4b   : > { %p1056_p5 = por %p1055_p3, %p1054_p13 }
  0x4d   : > { %p1057_p7 = pnand %p1056_p5, %p1050_p2 }
  0x4f   : > { %1060 = shalt.err (!%p1057_p7)
}
  0x50   : > { %s1061_s10 = scalar_lea.vmem %s1346_s16, 128  ;;  %s1170_s13 = smov [#allocation4]  }
  0x51   : > { %p1062_p10 = scmp.ne.s32.totalorder %s1346_s16, %s1061_s10  ;;  %s1066_s14 = sshll.u32 %s1170_s13, 4  ;;  %s1067_s14 = int_to_ptr.vmem [resolvable:$false] %s1066_s14 }
  0x52   : > { %s1068_s25 = scalar_lea.vmem %s1067_s14, 256  ;;  %p1069_p4 = scmp.lt.s32.totalorder %s1346_s16, %s1067_s14 }
  0x53   : > { %p1064_p9 = pnand %p1062_p10, %p1048_p1  ;;  %p1070_p6 = scmp.lt.s32.totalorder %s1068_s25, %s1061_s10 }
  0x55   : > { %p1065_p0 = pneg %p1064_p9  ;;  %p1071_p8 = por %p1070_p6, %p1069_p4 }
  0x57   : > { %p1072_p13 = pnand %p1071_p8, %p1065_p0 }
  0x59   : > { %1075 = shalt.err (!%p1072_p13)
}
  0x5a   : > { %923 = dma.hbm_to_vmem [thread:$0]  (!%p1342_p11), %s1338_s15, 128, %s1346_s16, %s196_s23  }
  0x5b   : > { %p1680_p2 = scmp.ne.s32.totalorder %s1675_s28, 0 }
  0x5c   : > { %s1376_s29 = sand.u32 (!%p1680_p2), 1, %s1150_s18   ;;  %p1681_p1 = scmp.ne.s32.totalorder (!%p1680_p2), %s1673_s26, 0 }
  0x5d   : > { %218 = sbr.rel (%p1680_p2) target bundleno = 345 (0x159), region = 36  ;;  %s870_s5 = sshll.u32 (!%p1680_p2), %s1376_s29, 3 }
  0x5e   : > { %s221_s6 = scalar_lea.sflag (!%p1680_p2), [#allocation5], %s1376_s29  ;;  %s224_s9 = scalar_lea.vmem (!%p1680_p2), [#allocation4], %s870_s5 }
  0x64   : > { %1129 = dma.done.wait (%p1681_p1), %s221_s6, 128  }
  0x65   : > { %1131 = vsyncadd (%p1681_p1), %s221_s6, 4294967168  ;;  %p1682_p3 = scmp.ne.s32.totalorder %s1671_s24, 0 }
  0x67   : > { %1133 = dma.done.wait (%p1682_p3), [#allocation9], 128  }
  0x68   : > { %1135 = vsyncadd (%p1682_p3), [#allocation9], 4294967168 }
  0x69   : > { %1137 = dma.done.wait (%p1682_p3), [#allocation7], 16  }
  0x6a   : > { %1139 = vsyncadd (%p1682_p3), [#allocation7], 4294967280 }
  0x6b   : > { %237 = sfence }
  0x6c   : > { %v258_v0 = vld [vmem:[%s224_s9] sm:$0xff]  ;;  %vm262_vm0 = vcmask 1043456   ;;  %v1171_v12 = vmov 1966171168   ;;  %v301_v14 = vlaneseq  ;;  %v1172_v40 = vmov 1983009808  }
  0x6d   : > { %v260_v1 = vcombine.high %v258_v0, %v258_v0  ;;  %v263_v2 = vsel %vm262_vm0, %v258_v0, -inf  ;;  %v277_v3 = vsel %vm262_vm0, %v258_v0, 0.0  ;;  %v299_v13 = vunpack.c.l.s4 %v1171_v12  ;;  %s1173_s24 = smov 16   ;;  %s1174_s26 = smov 17  }
  0x6e   : > { %v264_v4 = vrot.slane %v263_v2, 4  ;;  %v278_v5 = vrot.slane %v277_v3, 4  ;;  %v1393_v24 = vshrl.u32 %v301_v14, 7  ;;  %v404_v41 = vunpack.c.l.s4 %v1172_v40  ;;  %s1175_s28 = smov 15   ;;  %s882_s15 = sld [smem:[#allocation10 + $0xd]] }
  0x6f   : > { %v270_v6 = vsel %vm262_vm0, %v260_v1, -inf  ;;  %v284_v7 = vsel %vm262_vm0, %v260_v1, 0.0  ;;  %v300_v23 = vunpack.c.0.s8 %v299_v13  ;;  %vm1401_vm1 = vcmp.lt.s32.totalorder %v301_v14, 256  ;;  %s1176_s16 = smov 1   ;;  %s881_s3 = sld [smem:[#allocation10 + $0x4]] }
  0x70   : > { %v265_v8 = vmax.f32 %v263_v2, %v264_v4  ;;  %v271_v9 = vrot.slane %v270_v6, 4  ;;  %v279_v10 = vadd.f32 %v278_v5, %v277_v3  ;;  %v285_v11 = vrot.slane %v284_v7, 4  ;;  %s1177_s23 = smov 127   ;;  %s1178_s7 = smov 113  }
  0x71   : > { %v1396_v35 = vsub.s32 %v300_v23, %v1393_v24  ;;  %v405_v45 = vunpack.c.0.s8 %v404_v41  ;;  %v1413_v55 = vsub.s32 0, %v1393_v24  ;;  %v578_v57 = vsub.s32 2, %v1393_v24  ;;  %s1179_s11 = smov 112   ;;  %s1180_s10 = smov 111  }
  0x72   : > { %v266_v15 = vrot.slane %v265_v8, 2  ;;  %v272_v16 = vmax.f32 %v270_v6, %v271_v9  ;;  %v280_v17 = vrot.slane %v279_v10, 2  ;;  %v286_v18 = vadd.f32 %v285_v11, %v284_v7  ;;  %s1423_s13 = sld [smem:[#allocation10 + $0x1]]  ;;  %s1425_s14 = sld [smem:[#allocation10 + $0xa]] }
  0x73   : > { %v408_v46 = vsub.s32 %v405_v45, %v1393_v24  ;;  %s1427_s25 = sld [smem:[#allocation10 + $0x2]]  ;;  %s1429_s5 = sld [smem:[#allocation10 + $0xb]]  ;;  %v1436_v60 = vand.u32 127, %v301_v14  ;;  %v393_v61 = vld [vmem:[#allocation8] ss:$4 sm:$0x3] }
  0x74   : > { %v267_v19 = vmax.f32 %v265_v8, %v266_v15  ;;  %v273_v20 = vrot.slane %v272_v16, 2  ;;  %v281_v21 = vadd.f32 %v280_v17, %v279_v10  ;;  %v287_v22 = vrot.slane %v286_v18, 2  ;;  %s1431_s6 = sld [smem:[#allocation10 + $0x3]]  ;;  %s1433_s9 = sld [smem:[#allocation10 + $0xc]] }
  0x75   : > { %v564_v50 = vstv %s882_s15  ;;  %v561_v52 = vstv %s881_s3  ;;  %v445_v62 = vsub.s32 1, %v1393_v24  ;;  %s1445_s15 = sld [smem:[#allocation3]]  ;;  %v399_v1 = vld [vmem:[#allocation8 + $0x3] ss:$4 sm:$0x3]  ;;  %vm470_vm2 = vcmp.lt.s32.totalorder %v1436_v60, 16 }
  0x76   : > { %v268_v25 = vrot.slane %v267_v19, 1  ;;  %v274_v26 = vmax.f32 %v272_v16, %v273_v20  ;;  %v282_v27 = vrot.slane %v281_v21, 1  ;;  %v288_v28 = vadd.f32 %v287_v22, %v286_v18  ;;  %s1453_s3 = sld [smem:[#allocation10 + $0x6]]  ;;  %v397_v10 = vld [vmem:[#allocation8 + $0x2] ss:$4 sm:$0x3] }
  0x77   : > { %v1458_v3 = vrot.slane %v393_v61, %v1413_v55  ;;  %v1460_v4 = vrot.slane %v393_v61, %v445_v62  ;;  %vm497_vm3 = vcmp.lt.s32.totalorder %v1436_v60, 15  ;;  %v1469_v8 = vrot.slane %v399_v1, %v1413_v55 }
  0x78   : > { %v269_v29 = vmax.f32 %v267_v19, %v268_v25  ;;  %v275_v30 = vrot.slane %v274_v26, 1  ;;  %v283_v31 = vadd.f32 %v282_v27, %v281_v21  ;;  %v289_v32 = vrot.slane %v288_v28, 1 }
  0x79   : > { %v474_v2 = vstv %s1423_s13  ;;  %v478_v5 = vstv %s1425_s14  ;;  %v501_v6 = vstv %s1427_s25  ;;  %v505_v7 = vstv %s1429_s5  ;;  %s1561_s13 = sld [smem:[#allocation10 + $0x8]]  ;;  %s873_s14 = sshll.u32 %s1376_s29, 1 }
  0x7a   : > { %v276_v33 = vmax.f32 %v274_v26, %v275_v30  ;;  %v290_v34 = vadd.f32 %v289_v32, %v288_v28  ;;  %v1471_v9 = vrot.slane %v399_v1, %v445_v62  ;;  %vm537_vm4 = vcmp.lt.s32.totalorder %v1436_v60, 1  ;;  %v395_v26 = vld [vmem:[#allocation8 + $0x1] ss:$4 sm:$0x3]  ;;  %s900_s25 = sshll.u32 %s1158_s20, 5  ;;  %s257_s5 = scalar_lea.vmem [#allocation11], %s873_s14 }
  0x7b   : > { %v541_v13 = vstv %s1431_s6  ;;  %v545_v14 = vstv %s1433_s9  ;;  %vm419_vm5 = vcmp.lt.s32.totalorder %v1436_v60, 17  ;;  %v1486_v21 = vrot.slane %v397_v10, %v1413_v55  ;;  %s757_s6 = sshll.u32 %s257_s5, 4  ;;  %s743_s20 = scalar_lea.sflag [#allocation6], %s1376_s29  ;;  %s1613_s6 = int_to_ptr.vmem [resolvable:$true] %s757_s6 }
  0x7c   : > { %v297_v36 = vcombine.low %v269_v29, %v276_v33  ;;  %v320_v37 = vcombine.low %v283_v31, %v290_v34  ;;  %v1488_v22 = vrot.slane %v397_v10, %v445_v62  ;;  %v401_v23 = vstv %s1445_s15  ;;  %s1181_s15 = smov [#allocation11]  }
  0x7d   : > { %vm588_vm6 = vcmp.lt.s32.totalorder %v1436_v60, 127  ;;  %v1501_v40 = vrot.slane %v395_v26, %v1413_v55  ;;  %vm615_vm7 = vcmp.lt.s32.totalorder %v1436_v60, 113  ;;  %v1505_v45 = vrot.slane %v395_v26, %v445_v62 }
  0x7e   : > { %v304_v38 = vrot.slane %v297_v36, %v1396_v35  ;;  %v327_v39 = vrot.slane %v320_v37, %v1396_v35  ;;  %v619_v36 = vstv %s1453_s3  ;;  %vm655_vm8 = vcmp.lt.s32.totalorder %v1436_v60, 112 }
  0x7f   : > { %vm682_vm9 = vcmp.lt.s32.totalorder %v1436_v60, 111 }
  0x80   : > { %v311_v43 = vrot.slane %v304_v38, %v1396_v35  ;;  %v334_v44 = vrot.slane %v327_v39, %v1396_v35 }
  0x82   : > { %317 = vst.msk [vmem:[#allocation2] ss:$2 sm:$0x3] %vm1401_vm1, %v311_v43  ;;  %337 = vst.msk [vmem:[#allocation2 + $0x1] ss:$2 sm:$0x3] %vm1401_vm1, %v334_v44 }
  0x89   : > { %v392_v47 = vld [vmem:[#allocation2] sm:$0xf] }
  0x8a   : > { %v409_v48 = vrot.slane %v392_v47, %v408_v46  ;;  %v565_v51 = vmul.f32 %v564_v50, %v392_v47  ;;  %v562_v53 = vmul.f32 %v561_v52, %v392_v47 }
  0x8c   : > { %466 = vrot.lane.b32.xlu1 %v409_v48, %s1173_s24  ;;  %413 = vrot.lane.b32.xlu0 %v409_v48, %s1174_s26  ;;  %v410_v49 = vcombine.high %v409_v48, %v409_v48  ;;  %v883_v54 = vrot.slane %v565_v51, 9 }
  0x8e   : > { %v1415_v56 = vadd.f32 %v883_v54, %v562_v53 }
  0x90   : > { %493 = vrot.lane.b32.xlu0 %v409_v48, %s1175_s28  ;;  %468 = vrot.lane.b32.xlu1 %v410_v49, %s1173_s24  ;;  %v575_v58 = vrot.slane %v1415_v56, %v1413_v55  ;;  %v1421_v59 = vrot.slane %v1415_v56, %v578_v57  ;;  %s1438_s24 = sld [smem:[#allocation10]] }
  0x94   : > { %533 = vrot.lane.b32.xlu0 %v409_v48, %s1176_s16  ;;  %495 = vrot.lane.b32.xlu1 %v410_v49, %s1175_s28  ;;  %s1443_s28 = sld [smem:[#allocation10 + $0x5]] }
  0x96   : > { %v423_v17 = vstv %s1438_s24 }
  0x98   : > { %535 = vrot.lane.b32.xlu1 %v410_v49, %s1176_s16  ;;  %415 = vrot.lane.b32.xlu0 %v410_v49, %s1174_s26  ;;  %s1440_s26 = sld [smem:[#allocation10 + $0x9]]  ;;  %s1447_s16 = sld [smem:[#allocation10 + $0xe]] }
  0x9a   : > { %v592_v24 = vstv %s1443_s28  ;;  %s1076_s28 = scalar_lea.vmem %s1613_s6, 32 }
  0x9b   : > { %p1077_p11 = scmp.ne.s32.totalorder %s1613_s6, %s1076_s28 }
  0x9c   : > { %586 = vrot.lane.b32.xlu1 %v410_v49, %s1177_s23  ;;  %584 = vrot.lane.b32.xlu0 %v409_v48, %s1177_s23  ;;  %s1455_s23 = sld [smem:[#allocation10 + $0xf]] }
  0x9d   : > { %p1078_p5 = pnand %p1077_p11, %p1324_p12 }
  0x9e   : > { %v427_v18 = vstv %s1440_s26  ;;  %v596_v25 = vstv %s1447_s16  ;;  %s1611_s26 = scalar_lea.hbm %s1666_s4, %s900_s25  ;;  %s1080_s16 = sshll.u32 %s1181_s15, 4  ;;  %s1081_s16 = int_to_ptr.vmem [resolvable:$false] %s1080_s16 }
  0x9f   : > { %p1079_p7 = pneg %p1078_p5  ;;  %s1082_s3 = scalar_lea.vmem %s1081_s16, 64 }
  0xa0   : > { %613 = vrot.lane.b32.xlu1 %v410_v49, %s1178_s7  ;;  %611 = vrot.lane.b32.xlu0 %v409_v48, %s1178_s7  ;;  %s1464_s7 = sld [smem:[#allocation10 + $0x7]]  ;;  %p1083_p10 = scmp.lt.s32.totalorder %s1613_s6, %s1081_s16 }
  0xa1   : > { %p1084_p9 = scmp.lt.s32.totalorder %s1082_s3, %s1076_s28 }
  0xa2   : > { %v623_v37 = vstv %s1455_s23 }
  0xa3   : > { %p1085_p0 = por %p1084_p9, %p1083_p10 }
  0xa4   : > { %653 = vrot.lane.b32.xlu1 %v410_v49, %s1179_s11  ;;  %651 = vrot.lane.b32.xlu0 %v409_v48, %s1179_s11  ;;  %s1473_s11 = sld [smem:[#allocation10 + $0x10]] }
  0xa5   : > { %p1086_p4 = pnand %p1085_p0, %p1079_p7 }
  0xa6   : > { %v659_v41 = vstv %s1464_s7 }
  0xa8   : > { %680 = vrot.lane.b32.xlu1 %v410_v49, %s1180_s10  ;;  %678 = vrot.lane.b32.xlu0 %v409_v48, %s1180_s10  ;;  %s1514_s10 = sld [smem:[#allocation10 + $0x11]] }
  0xaa   : > { %v663_v46 = vstv %s1473_s11 }
  0xfe   : > { %v467_v63 = vpop.permute.xlu1 %466  ;;  %v1449_v0 = vpop.permute.xlu0 %413 }
 0x102   : > { %v494_v11 = vpop.permute.xlu0 %493  ;;  %v469_v12 = vpop.permute.xlu1 %468 }
 0x103   : > { %v471_v15 = vsel %vm470_vm2, %v467_v63, %v469_v12  ;;  %v472_v16 = vsel %vm470_vm2, %v469_v12, %v467_v63 }
 0x104   : > { %v479_v19 = vmul.f32 %v478_v5, %v472_v16  ;;  %v480_v20 = vmul.f32 %v478_v5, %v471_v15  ;;  %v475_v27 = vmul.f32 %v474_v2, %v472_v16  ;;  %v476_v28 = vmul.f32 %v474_v2, %v471_v15 }
 0x106   : > { %v483_v29 = vrot.slane %v479_v19, 1  ;;  %v484_v30 = vrot.slane %v480_v20, 1  ;;  %v534_v31 = vpop.permute.xlu0 %533  ;;  %v496_v32 = vpop.permute.xlu1 %495 }
 0x107   : > { %v498_v33 = vsel %vm497_vm3, %v494_v11, %v496_v32  ;;  %v499_v34 = vsel %vm497_vm3, %v496_v32, %v494_v11 }
 0x108   : > { %v487_v38 = vadd.f32 %v483_v29, %v475_v27  ;;  %v488_v39 = vadd.f32 %v484_v30, %v476_v28  ;;  %v506_v43 = vmul.f32 %v505_v7, %v499_v34  ;;  %v507_v44 = vmul.f32 %v505_v7, %v498_v33 }
 0x109   : > { %v502_v49 = vmul.f32 %v501_v6, %v499_v34  ;;  %v503_v50 = vmul.f32 %v501_v6, %v498_v33 }
 0x10a   : > { %v1509_v47 = vmul.f32 %v487_v38, %v1458_v3  ;;  %v1512_v48 = vmul.f32 %v488_v39, %v1460_v4  ;;  %v536_v51 = vpop.permute.xlu1 %535  ;;  %v416_v52 = vpop.permute.xlu0 %415  ;;  %v510_v53 = vrot.slane %v506_v43, 1  ;;  %v511_v54 = vrot.slane %v507_v44, 1 }
 0x10b   : > { %v538_v57 = vsel %vm537_vm4, %v534_v31, %v536_v51  ;;  %v539_v61 = vsel %vm537_vm4, %v536_v51, %v534_v31  ;;  %v420_v6 = vsel %vm419_vm5, %v1449_v0, %v416_v52  ;;  %v421_v10 = vsel %vm419_vm5, %v416_v52, %v1449_v0 }
 0x10c   : > { %v542_v62 = vmul.f32 %v541_v13, %v539_v61  ;;  %v543_v63 = vmul.f32 %v541_v13, %v538_v57  ;;  %v546_v1 = vmul.f32 %v545_v14, %v539_v61  ;;  %v547_v2 = vmul.f32 %v545_v14, %v538_v57 }
 0x10d   : > { %v514_v5 = vadd.f32 %v510_v53, %v502_v49  ;;  %v515_v7 = vadd.f32 %v511_v54, %v503_v50  ;;  %v424_v15 = vmul.f32 %v423_v17, %v421_v10  ;;  %v425_v16 = vmul.f32 %v423_v17, %v420_v6 }
 0x10e   : > { %v550_v11 = vrot.slane %v546_v1, 1  ;;  %v551_v12 = vrot.slane %v547_v2, 1  ;;  %v587_v19 = vpop.permute.xlu1 %586  ;;  %v585_v13 = vpop.permute.xlu0 %584  ;;  %v428_v26 = vmul.f32 %v427_v18, %v421_v10  ;;  %v429_v27 = vmul.f32 %v427_v18, %v420_v6 }
 0x10f   : > { %v516_v14 = vmul.f32 %v514_v5, %v1458_v3  ;;  %v517_v20 = vmul.f32 %v515_v7, %v1460_v4  ;;  %v589_v0 = vsel %vm588_vm6, %v585_v13, %v587_v19  ;;  %v590_v17 = vsel %vm588_vm6, %v587_v19, %v585_v13 }
 0x110   : > { %v554_v28 = vadd.f32 %v550_v11, %v542_v62  ;;  %v555_v29 = vadd.f32 %v551_v12, %v543_v63  ;;  %v432_v32 = vrot.slane %v428_v26, 1  ;;  %v433_v33 = vrot.slane %v429_v27, 1 }
 0x111   : > { %v529_v30 = vmul.f32 %v1469_v8, %v516_v14  ;;  %v530_v31 = vmul.f32 %v1471_v9, %v517_v20  ;;  %v690_v43 = vstv %s1514_s10  ;;  %v597_v50 = vmul.f32 %v596_v25, %v589_v0 }
 0x112   : > { %v556_v18 = vmul.f32 %v554_v28, %v1486_v21  ;;  %v557_v34 = vmul.f32 %v555_v29, %v1488_v22  ;;  %v614_v38 = vpop.permute.xlu1 %613  ;;  %v612_v39 = vpop.permute.xlu0 %611  ;;  %v436_v44 = vadd.f32 %v432_v32, %v424_v15  ;;  %v437_v49 = vadd.f32 %v433_v33, %v425_v16 }
 0x113   : > { %v598_v51 = vmul.f32 %v596_v25, %v590_v17  ;;  %v593_v52 = vmul.f32 %v592_v24, %v589_v0  ;;  %v594_v53 = vmul.f32 %v592_v24, %v590_v17  ;;  %v616_v54 = vsel %vm615_vm7, %v612_v39, %v614_v38 }
 0x114   : > { %v617_v57 = vsel %vm615_vm7, %v614_v38, %v612_v39  ;;  %v449_v61 = vmul.f32 %v1458_v3, %v436_v44  ;;  %v450_v62 = vmul.f32 %v1460_v4, %v437_v49  ;;  %v601_v63 = vrot.slane %v597_v50, 1 }
 0x115   : > { %v602_v1 = vrot.slane %v598_v51, 1  ;;  %v620_v2 = vmul.f32 %v619_v36, %v616_v54  ;;  %v621_v25 = vmul.f32 %v619_v36, %v617_v57  ;;  %v624_v24 = vmul.f32 %v623_v37, %v616_v54 }
 0x116   : > { %v625_v5 = vmul.f32 %v623_v37, %v617_v57  ;;  %v654_v7 = vpop.permute.xlu1 %653  ;;  %v652_v6 = vpop.permute.xlu0 %651  ;;  %v462_v3 = vmul.f32 %v1486_v21, %v449_v61  ;;  %v463_v4 = vmul.f32 %v1488_v22, %v450_v62  ;;  %v605_v10 = vadd.f32 %v601_v63, %v593_v52 }
 0x117   : > { %v606_v11 = vadd.f32 %v602_v1, %v594_v53  ;;  %v628_v12 = vrot.slane %v624_v24, 1  ;;  %v656_v36 = vsel %vm655_vm8, %v652_v6, %v654_v7  ;;  %v657_v37 = vsel %vm655_vm8, %v654_v7, %v652_v6 }
 0x118   : > { %v629_v15 = vrot.slane %v625_v5, 1  ;;  %v464_v16 = vadd.f32 %v462_v3, %v401_v23  ;;  %v465_v19 = vadd.f32 %v463_v4, %v401_v23  ;;  %v607_v13 = vmul.f32 %v605_v10, %v1469_v8 }
 0x119   : > { %v608_v14 = vmul.f32 %v606_v11, %v1471_v9  ;;  %v632_v20 = vadd.f32 %v628_v12, %v620_v2  ;;  %v660_v27 = vmul.f32 %v659_v41, %v656_v36  ;;  %v661_v28 = vmul.f32 %v659_v41, %v657_v37 }
 0x11a   : > { %v633_v26 = vadd.f32 %v629_v15, %v621_v25  ;;  %v681_v29 = vpop.permute.xlu1 %680  ;;  %v679_v0 = vpop.permute.xlu0 %678  ;;  %v491_v17 = vadd.f32 %v1509_v47, %v464_v16  ;;  %v492_v32 = vadd.f32 %v1512_v48, %v465_v19  ;;  %v664_v33 = vmul.f32 %v663_v46, %v656_v36 }
 0x11b   : > { %v665_v23 = vmul.f32 %v663_v46, %v657_v37  ;;  %v645_v38 = vmul.f32 %v1501_v40, %v632_v20  ;;  %v683_v44 = vsel %vm682_vm9, %v679_v0, %v681_v29  ;;  %v684_v41 = vsel %vm682_vm9, %v681_v29, %v679_v0 }
 0x11c   : > { %v646_v39 = vmul.f32 %v1505_v45, %v633_v26  ;;  %v531_v49 = vadd.f32 %v529_v30, %v491_v17  ;;  %v532_v50 = vadd.f32 %v530_v31, %v492_v32  ;;  %v668_v51 = vrot.slane %v664_v33, 1 }
 0x11d   : > { %v669_v47 = vrot.slane %v665_v23, 1  ;;  %v647_v48 = vmul.f32 %v645_v38, %v1486_v21  ;;  %v686_v53 = vstv %s1561_s13  ;;  %v691_v62 = vmul.f32 %v690_v43, %v683_v44 }
 0x11e   : > { %v648_v52 = vmul.f32 %v646_v39, %v1488_v22  ;;  %v558_v46 = vadd.f32 %v556_v18, %v531_v49  ;;  %v559_v54 = vadd.f32 %v557_v34, %v532_v50  ;;  %v672_v57 = vadd.f32 %v668_v51, %v660_v27 }
 0x11f   : > { %v673_v61 = vadd.f32 %v669_v47, %v661_v28  ;;  %v692_v63 = vmul.f32 %v690_v43, %v684_v41  ;;  %v687_v21 = vmul.f32 %v686_v53, %v683_v44  ;;  %v688_v2 = vmul.f32 %v686_v53, %v684_v41 }
 0x120   : > { %v582_v60 = vadd.f32 %v575_v58, %v558_v46  ;;  %v583_v30 = vadd.f32 %v1421_v59, %v559_v54  ;;  %v674_v31 = vmul.f32 %v672_v57, %v1501_v40  ;;  %v695_v22 = vrot.slane %v691_v62, 1 }
 0x121   : > { %v675_v1 = vmul.f32 %v673_v61, %v1505_v45  ;;  %v696_v25 = vrot.slane %v692_v63, 1 }
 0x122   : > { %v609_v18 = vadd.f32 %v607_v13, %v582_v60  ;;  %v610_v34 = vadd.f32 %v608_v14, %v583_v30  ;;  %v699_v24 = vadd.f32 %v695_v22, %v687_v21 }
 0x123   : > { %v700_v5 = vadd.f32 %v696_v25, %v688_v2 }
 0x124   : > { %v649_v7 = vadd.f32 %v647_v48, %v609_v18  ;;  %v650_v43 = vadd.f32 %v648_v52, %v610_v34  ;;  %v701_v6 = vmul.f32 %v699_v24, %v1501_v40 }
 0x125   : > { %v702_v55 = vmul.f32 %v700_v5, %v1505_v45 }
 0x126   : > { %v676_v56 = vadd.f32 %v674_v31, %v649_v7  ;;  %v677_v58 = vadd.f32 %v675_v1, %v650_v43  ;;  %v703_v59 = vmul.f32 %v701_v6, %v1469_v8 }
 0x127   : > { %v704_v3 = vmul.f32 %v702_v55, %v1471_v9 }
 0x128   : > { %v705_v4 = vadd.f32 %v703_v59, %v676_v56 }
 0x129   : > { %v706_v10 = vadd.f32 %v704_v3, %v677_v58 }
 0x12a   : > { %v892_v11 = vmul.f32 -1.442695, %v705_v4 }
 0x12b   : > { %v893_v12 = vmul.f32 -1.442695, %v706_v10 }
 0x12c   : > { %995 = vpow2.f32 %v892_v11 }
 0x12d   : > { %997 = vpow2.f32 %v893_v12 }
 0x136   : > { %v996_v15 = vpop.eup %995 }
 0x137   : > { %v998_v36 = vpop.eup %997  ;;  %v713_v37 = vadd.f32 1.0, %v996_v15 }
 0x138   : > { %v714_v40 = vadd.f32 1.0, %v998_v36 }
 0x139   : > { %999 = vrcp.f32 %v713_v37 }
 0x13a   : > { %1001 = vrcp.f32 %v714_v40 }
 0x143   : > { %v1000_v45 = vpop.eup %999 }
 0x144   : > { %v1002_v8 = vpop.eup %1001 }
 0x145   : > { %v721_v16 = vcombine.low %v1000_v45, %v1002_v8 }
 0x147   : > { %v728_v9 = vrot.slane %v721_v16, %v1396_v35 }
 0x149   : > { %v735_v19 = vrot.slane %v728_v9, %v1396_v35 }
 0x14b   : > { %741 = vst.msk [vmem:[%s257_s5] sm:$0x3] %vm1401_vm1, %v735_v19 }
 0x14c   : > { %1089 = shalt.err (!%p1086_p4)
}
 0x14d   : > { %s1090_s29 = scalar_lea.hbm %s1611_s26, 32  ;;  %s1094_s11 = scalar_lea.hbm %s1666_s4, 64 }
 0x14e   : > { %p1091_p6 = scmp.ne.s32.totalorder %s1611_s26, %s1090_s29  ;;  %p1095_p2 = scmp.lt.u32.totalorder %s1611_s26, %s1666_s4 }
 0x14f   : > { %p1096_p1 = scmp.lt.u32.totalorder %s1094_s11, %s1090_s29  ;;  %p1098_p11 = scmp.lt.u32.totalorder %s1090_s29, %s1611_s26 }
 0x150   : > { %p1092_p8 = pnand %p1091_p6, %p1324_p12 }
 0x151   : > { %p1097_p3 = por %p1096_p1, %p1095_p2 }
 0x152   : > { %p1093_p13 = pneg %p1092_p8 }
 0x153   : > { %p1099_p5 = por %p1098_p11, %p1097_p3 }
 0x155   : > { %p1100_p7 = pnand %p1099_p5, %p1093_p13 }
 0x157   : > { %1103 = shalt.err (!%p1100_p7)
}
 0x158   : > { %911 = dma.vmem_to_hbm [thread:$0]  (%p1324_p12), %s1613_s6, 32, %s1611_s26, %s743_s20  }
 0x159 PF: > { %s769_s14 = sand.u32 1, %s1146_s17   ;;  %p1685_p10 = scmp.ne.s32.totalorder %s1674_s27, 0 }
 0x15a   : > { %p1686_p9 = scmp.ge.s32.totalorder %s1166_s22, 2  ;;  %s770_s25 = scalar_lea.sflag [#allocation6], %s769_s14 }
 0x15c   : > { %p925_p0 = pnand %p1686_p9, %p1685_p10 }
 0x15e   : > { %1141 = dma.done.wait (!%p925_p0), %s770_s25, 32  }
 0x15f   : > { %1143 = vsyncadd (!%p925_p0), %s770_s25, 4294967264  ;;  %s23_s22 = sadd.s32 1, %s1166_s22   ;;  %s1687_s17 = smov %s1150_s18 }
 0x160   : > { %p20_p4 = scmp.ge.s32.totalorder %s23_s22, 4   ;;  %s1688_s18 = smov %s1154_s19 }
 0x161   : > { %s1689_s19 = smov %s1333_s12  ;;  %s1690_s20 = smov %s1162_s21 }
 0x162   : > { %s1691_s21 = smov %s1693_s30  ;;  %22 = sbr.rel (!%p20_p4) target bundleno = 10 (0xa), region = 107 }
 0x169   :  { %775 = vsyncpa [#allocation5], 1 }
 0x16a   :  { %777 = vsyncpa [#allocation5 + $0x1], 1 }
 0x16b   :  { %778 = vsyncpa [#allocation9], 1 }
 0x16c   :  { %779 = vsyncpa [#allocation6], 1 }
 0x16d   :  { %781 = vsyncpa [#allocation6 + $0x1], 1 }
 0x16e   :  { %782 = vsyncpa [#allocation7], 1 }
 0x16f   :  { %784 = vsyncpa [#allocation7 + $0x1], 1 }

</bundles_post_ra>
